<compile_context>
chip_gen: v7x
topology: tpu7x:2x2x1
jax: 0.10.0
libtpu: 0.0.40
codegen_flags: <defaults>
</compile_context>

<pallas_src>
import jax
import jax.numpy as jnp
from jax.experimental import pallas as pl
from jax.experimental.pallas import tpu as pltpu


def _round_up(x, m):
    return ((x + m - 1) // m) * m


def _vq_assign_kernel(z_ref, e_ref, esq_ref, idx_ref):
    """One tile of tokens -> nearest-codebook-entry indices.

    z_ref   : (TILE_N, Dp) bf16    encoder outputs (zero-padded along D)
    e_ref   : (Kp, Dp)     bf16    codebook (zero-padded), VMEM-resident
    esq_ref : (1, Kp)      f32     ||e_k||^2 (1e30 for padded codes)
    idx_ref : (1, 1, TILE_N) i32   argmin_k ||z - e_k||^2 (lane-dense)
    """
    z = z_ref[...]
    e = e_ref[...]
    e_sq = esq_ref[...]

    # -2 * z @ e^T on the MXU (bf16 inputs, f32 accumulation).  ||z||^2 is a
    # per-row constant, so argmin_k (||e_k||^2 - 2 z.e_k) == argmin_k d(z, e_k).
    cross = jax.lax.dot_general(z, e, (((1,), (1,)), ((), ())),
                                preferred_element_type=jnp.float32)    # (T, Kp)
    scores = e_sq - 2.0 * cross

    # first-index argmin over the codebook axis (matches torch.argmin ties)
    tile_n, kp = scores.shape
    iota = jax.lax.broadcasted_iota(jnp.int32, (tile_n, kp), 1)
    min_s = jnp.min(scores, axis=1, keepdims=True)
    idx = jnp.min(jnp.where(scores == min_s, iota, kp), axis=1)        # (T,)
    idx_ref[...] = idx.astype(jnp.int32)[None, None, :]


def vector_quantizer_forward(z, mask, embedding, beta, *, tile_n=256):
    """Forward of VectorQuantizer (encoder_type='timernn').

    z: (B, T, e_dim), mask: (B, T) or None, embedding: (n_e, e_dim).
    Returns (loss, z_q, perplexity, min_encodings, min_encoding_indices).
    """
    B, T, D = z.shape
    K = embedding.shape[0]
    N = B * T

    z_flat = z.reshape(N, D).astype(jnp.float32)
    emb = embedding.astype(jnp.float32)

    # ---- nearest-codebook assignment (Pallas kernel) -----------------------
    # The assignment is non-differentiable (piecewise constant), so the kernel
    # consumes stop_gradient'ed inputs; gradients flow through the epilogue.
    z_ng = jax.lax.stop_gradient(z_flat)
    e_ng = jax.lax.stop_gradient(emb)

    d_pad = _round_up(D, 128)                       # lane-align embedding dim
    k_pad = _round_up(K, 128)                       # lane-align codebook size
    tile = min(_round_up(tile_n, 8), _round_up(N, 8))
    n_pad = _round_up(N, tile)
    num_tiles = n_pad // tile

    z_in = jnp.zeros((n_pad, d_pad), jnp.bfloat16).at[:N, :D].set(
        z_ng.astype(jnp.bfloat16))
    e_in = jnp.zeros((k_pad, d_pad), jnp.bfloat16).at[:K, :D].set(
        e_ng.astype(jnp.bfloat16))
    e_sq = jnp.full((1, k_pad), 1e30, jnp.float32).at[0, :K].set(
        jnp.sum(e_ng * e_ng, axis=1))               # padded codes never win

    # VMEM budget: double-buffered z tile + resident codebook + f32 scratch.
    vmem_est = (2 * tile * d_pad * 2 + 2 * k_pad * d_pad * 2
                + 2 * k_pad * 4 + 2 * tile * 4 + 4 * tile * k_pad * 4)
    vmem_limit = int(min(64 * 1024 * 1024,
                         max(32 * 1024 * 1024, 2 * vmem_est)))

    idx_tiles = pl.pallas_call(
        _vq_assign_kernel,
        grid=(num_tiles,),
        in_specs=[
            pl.BlockSpec((tile, d_pad), lambda i: (i, 0)),    # z: tiled over N
            pl.BlockSpec((k_pad, d_pad), lambda i: (0, 0)),   # codebook resident
            pl.BlockSpec((1, k_pad), lambda i: (0, 0)),       # ||e||^2 resident
        ],
        out_specs=pl.BlockSpec((1, 1, tile), lambda i: (i, 0, 0)),
        out_shape=jax.ShapeDtypeStruct((num_tiles, 1, tile), jnp.int32),
        compiler_params=pltpu.CompilerParams(
            dimension_semantics=("parallel",),      # independent tiles (v7x 2 TCs)
            vmem_limit_bytes=vmem_limit),
    )(z_in, e_in, e_sq)

    idx = idx_tiles.reshape(n_pad)[:N]              # drop row padding -> (N,)

    # ---- cheap, exact f32 epilogue in plain JAX ----------------------------
    min_encoding_indices = idx[:, None].astype(jnp.int32)            # (N, 1)
    min_encodings = jax.nn.one_hot(idx, K, dtype=jnp.float32)        # (N, K)
    z_q_flat = emb[idx]                                              # exact gather

    if mask is not None:
        m = mask.reshape(N, 1).astype(jnp.float32)
        denom = jnp.sum(m) + 1e-6
        commitment_loss = jnp.sum(
            ((jax.lax.stop_gradient(z_q_flat) - z_flat) * m) ** 2) / denom
        codebook_loss = jnp.sum(
            ((z_q_flat - jax.lax.stop_gradient(z_flat)) * m) ** 2) / denom
    else:
        commitment_loss = jnp.mean((jax.lax.stop_gradient(z_q_flat) - z_flat) ** 2)
        codebook_loss = jnp.mean((z_q_flat - jax.lax.stop_gradient(z_flat)) ** 2)
    loss = commitment_loss + beta * codebook_loss

    # straight-through estimator: z + (z_q - z).detach()
    z_q = (z_flat + jax.lax.stop_gradient(z_q_flat - z_flat)).reshape(B, T, D)

    e_mean = jnp.mean(min_encodings, axis=0)
    perplexity = jnp.exp(-jnp.sum(e_mean * jnp.log(e_mean + 1e-10)))

    return loss, z_q, perplexity, min_encodings, min_encoding_indices


if __name__ == "__main__":
    n_e, e_dim, beta = 16, 32, 0.25
    B, T = 2, 8

    key = jax.random.PRNGKey(0)
    k_emb, k_z, k_m = jax.random.split(key, 3)

    # nn.Embedding(n_e, e_dim) with uniform(-1/n_e, 1/n_e) init
    embedding = jax.random.uniform(k_emb, (n_e, e_dim), jnp.float32,
                                   minval=-1.0 / n_e, maxval=1.0 / n_e)
    z = jax.random.normal(k_z, (B, T, e_dim), jnp.float32) * 0.1
    mask = jax.random.uniform(k_m, (B, T)) > 0.3      # boolean time mask

    vq = jax.jit(vector_quantizer_forward, static_argnames=("tile_n",))

    loss, z_q, perplexity, min_encodings, min_idx = jax.block_until_ready(
        vq(z, mask, embedding, beta))

    # ---- pure-JAX reference (same bf16 MXU precision for the assignment) ----
    zf = z.reshape(-1, e_dim)
    cross = jax.lax.dot_general(zf.astype(jnp.bfloat16),
                                embedding.astype(jnp.bfloat16),
                                (((1,), (1,)), ((), ())),
                                preferred_element_type=jnp.float32)
    scores = jnp.sum(embedding ** 2, axis=1)[None, :] - 2.0 * cross
    idx_ref = jnp.argmin(scores, axis=1)

    zq_ref = embedding[idx_ref]
    mflat = mask.reshape(-1, 1).astype(jnp.float32)
    denom = jnp.sum(mflat) + 1e-6
    loss_ref = (1.0 + beta) * jnp.sum(((zq_ref - zf) * mflat) ** 2) / denom
    onehot_ref = jax.nn.one_hot(idx_ref, n_e, dtype=jnp.float32)
    e_mean_ref = jnp.mean(onehot_ref, axis=0)
    perp_ref = jnp.exp(-jnp.sum(e_mean_ref * jnp.log(e_mean_ref + 1e-10)))

    chosen = scores[jnp.arange(B * T), min_idx[:, 0]]
    assert bool(jnp.all(chosen <= jnp.min(scores, axis=1) + 1e-5)), "non-optimal code"
    assert min_idx.shape == (B * T, 1)
    assert bool(jnp.all(min_idx[:, 0] == idx_ref)), "index mismatch"
    assert min_encodings.shape == (B * T, n_e)
    assert bool(jnp.all(jnp.sum(min_encodings, axis=1) == 1.0)), "one-hot mismatch"
    assert bool(jnp.allclose(z_q.reshape(-1, e_dim), zq_ref, atol=1e-6)), "z_q mismatch"
    assert bool(jnp.allclose(loss, loss_ref, rtol=1e-5, atol=1e-7)), "loss mismatch"
    assert bool(jnp.allclose(perplexity, perp_ref, rtol=1e-5)), "perplexity mismatch"

    # multi-tile path (2 tiles of 8 rows) must agree with the single-tile path
    loss2, z_q2, perp2, enc2, idx2 = jax.block_until_ready(
        vq(z, mask, embedding, beta, tile_n=8))
    assert bool(jnp.all(idx2 == min_idx)), "multi-tile index mismatch"
    assert bool(jnp.allclose(z_q2, z_q)), "multi-tile z_q mismatch"
    assert bool(jnp.allclose(loss2, loss)), "multi-tile loss mismatch"

    # mask=None path (F.mse_loss semantics)
    loss_nm, _, _, _, _ = jax.block_until_ready(vq(z, None, embedding, beta))
    loss_nm_ref = (1.0 + beta) * jnp.mean((zq_ref - zf) ** 2)
    assert bool(jnp.allclose(loss_nm, loss_nm_ref, rtol=1e-5)), "unmasked loss mismatch"

    print("KERNEL_OK")
</pallas_src>

<mosaic_0001>
module attributes {stable_mosaic.version = 11 : i64} {
  func.func @_vq_assign_kernel(%arg0: i32, %arg1: memref<16x128xbf16, #tpu.memory_space<vmem>>, %arg2: memref<128x128xbf16, #tpu.memory_space<vmem>>, %arg3: memref<1x128xf32, #tpu.memory_space<vmem>>, %arg4: memref<1x1x16xi32, #tpu.memory_space<vmem>>) attributes {dimension_semantics = [#tpu.dimension_semantics<parallel>], iteration_bounds = array<i64: 1>, scalar_prefetch = 0 : i64, scratch_operands = 0 : i64, tpu.core_type = #tpu.core_type<tc>, window_params = [{transform_indices = @transform_0, window_bounds = array<i64: 16, 128>}, {pipeline_mode = #tpu.pipeline_mode<synchronous>, transform_indices = @transform_1, window_bounds = array<i64: 128, 128>}, {pipeline_mode = #tpu.pipeline_mode<synchronous>, transform_indices = @transform_2, window_bounds = array<i64: 1, 128>}, {transform_indices = @transform_3, window_bounds = array<i64: 1, 1, 16>}]} {
    %c0 = arith.constant 0 : index
    %c0_0 = arith.constant 0 : index
    %0 = vector.load %arg1[%c0, %c0_0] : memref<16x128xbf16, #tpu.memory_space<vmem>>, vector<16x128xbf16>
    %c0_1 = arith.constant 0 : index
    %c0_2 = arith.constant 0 : index
    %1 = vector.load %arg2[%c0_1, %c0_2] : memref<128x128xbf16, #tpu.memory_space<vmem>>, vector<128x128xbf16>
    %c0_3 = arith.constant 0 : index
    %c0_4 = arith.constant 0 : index
    %2 = vector.load %arg3[%c0_3, %c0_4] : memref<1x128xf32, #tpu.memory_space<vmem>>, vector<1x128xf32>
    %cst = arith.constant dense<0.000000e+00> : vector<16x128xf32>
    %3 = tpu.matmul %0, %1, %cst {dimension_numbers = #tpu.dot_dimension_numbers<[1], [1], [0], [0], [0, 0, 1, 0], [], []>} : vector<16x128xbf16>, vector<128x128xbf16>, vector<16x128xf32> -> vector<16x128xf32>
    %cst_5 = arith.constant 2.000000e+00 : f32
    %4 = vector.broadcast %cst_5 : f32 to vector<16x128xf32>
    %5 = arith.mulf %4, %3 : vector<16x128xf32>
    %6 = vector.broadcast %2 : vector<1x128xf32> to vector<16x128xf32>
    %7 = arith.subf %6, %5 : vector<16x128xf32>
    %8 = tpu.iota {dimensions = array<i32: 1>} : vector<16x128xi32>
    %cst_6 = arith.constant dense<0x7F800000> : vector<16xf32>
    %9 = vector.multi_reduction <minimumf>, %7, %cst_6 [1] : vector<16x128xf32> to vector<16xf32>
    %10 = vector.shape_cast %9 : vector<16xf32> to vector<16x1xf32>
    %11 = vector.broadcast %10 : vector<16x1xf32> to vector<16x128xf32>
    %12 = arith.cmpf oeq, %7, %11 : vector<16x128xf32>
    %c128_i32 = arith.constant 128 : i32
    %13 = vector.broadcast %c128_i32 : i32 to vector<16x128xi32>
    %14 = arith.select %12, %8, %13 : vector<16x128xi1>, vector<16x128xi32>
    %cst_7 = arith.constant dense<2147483647> : vector<16xi32>
    %15 = vector.multi_reduction <minsi>, %14, %cst_7 [1] : vector<16x128xi32> to vector<16xi32>
    %16 = vector.shape_cast %15 : vector<16xi32> to vector<1x1x16xi32>
    %c0_8 = arith.constant 0 : index
    %c0_9 = arith.constant 0 : index
    %c0_10 = arith.constant 0 : index
    %17 = vector.load %arg4[%c0_8, %c0_9, %c0_10] : memref<1x1x16xi32, #tpu.memory_space<vmem>>, vector<1x1x16xi32>
    tpu.vector_store %arg4[%c0_8, %c0_9, %c0_10], %16 {strides = array<i32>} : memref<1x1x16xi32, #tpu.memory_space<vmem>>, vector<1x1x16xi32>,
    return
  }
  func.func @transform_0(%arg0: i32) -> (i32, i32) {
    %c0_i32 = arith.constant 0 : i32
    %c0_i32_0 = arith.constant 0 : i32
    return %arg0, %c0_i32 : i32, i32
  }
  func.func @transform_1(%arg0: i32) -> (i32, i32) {
    %c0_i32 = arith.constant 0 : i32
    %c0_i32_0 = arith.constant 0 : i32
    %c0_i32_1 = arith.constant 0 : i32
    return %c0_i32, %c0_i32_0 : i32, i32
  }
  func.func @transform_2(%arg0: i32) -> (i32, i32) {
    %c0_i32 = arith.constant 0 : i32
    %c0_i32_0 = arith.constant 0 : i32
    %c0_i32_1 = arith.constant 0 : i32
    return %c0_i32, %c0_i32_0 : i32, i32
  }
  func.func @transform_3(%arg0: i32) -> (i32, i32, i32) {
    %c0_i32 = arith.constant 0 : i32
    %c0_i32_0 = arith.constant 0 : i32
    %c0_i32_1 = arith.constant 0 : i32
    return %arg0, %c0_i32, %c0_i32_0 : i32, i32, i32
  }
}

</mosaic_0001>

<bundles_post_ra>
// kernel: vector_quantizer_forward.1
= control target key start
LH: loop header
LB: loop body
LE: loop exit
PB: predicated region body
PF: predicated region fallthrough
CT: control target
= control target key end

     0   :  { %v244_v0 = vmov 0.0   ;;  %vm245_vm0 = vmmov 0   ;;  %v139_v19 = vlaneseq  ;;  %vm186_vm5 = vcmask 130112   ;;  %s299_s1 = inlined_call_operand.vmem [shape: bf16[128,128], index: 1, kind: input, shape index: {}]   ;;  %s300_s0 = inlined_call_operand.vmem [shape: bf16[16,128], index: 0, kind: input, shape index: {}]   ;;  %s301_s2 = inlined_call_operand.vmem [shape: f32[1,128], index: 2, kind: input, shape index: {}]   ;;  %s302_s3 = inlined_call_operand.vmem [shape: s32[1,1,16], index: 3, kind: output, shape index: {}]  }
   0x1   :  { %213 = vmatprep.subr.bf16.mxu0 %v244_v0  ;;  %v235_v1 = vld [vmem:[%s299_s1] sm:$0xff]   ;;  %229 = vmatprep.mubr.msk.bf16.mxu0 %vm245_vm0, %v244_v0  ;;  %v236_v2 = vld [vmem:[%s299_s1 + $0x8] sm:$0xff]   ;;  %v237_v3 = vld [vmem:[%s299_s1 + $0x10] sm:$0xff]   ;;  %vm188_vm6 = vcmask 122880  }
   0x2   :  { %214 = vmatpush3.bf16.xpose.msra.mxu0 %v235_v1  ;;  %v238_v4 = vld [vmem:[%s299_s1 + $0x18] sm:$0xff]   ;;  %v239_v5 = vld [vmem:[%s299_s1 + $0x20] sm:$0xff]   ;;  %v240_v6 = vld [vmem:[%s299_s1 + $0x28] sm:$0xff]   ;;  %v140_v20 = vand.u32 127, %v139_v19  ;;  %v178_v38 = vshrl.u32 %v139_v19, 7 }
   0x3   :  { %215 = vmatprep.subr.bf16.mxu0 %v244_v0  ;;  %v241_v7 = vld [vmem:[%s299_s1 + $0x30] sm:$0xff]   ;;  %v242_v8 = vld [vmem:[%s299_s1 + $0x38] sm:$0xff]   ;;  %v243_v9 = vld [vmem:[%s300_s0] sm:$0xff]  }
   0x4   :  { %v203_v11 = vld [vmem:[%s301_s2] ss:$0 sm:$0xff]  ;;  %v181_v42 = vadd.s32 4294967288, %v140_v20  ;;  %v179_v44 = vsub.s32 %v140_v20, %v178_v38 }
   0x6   :  { %v184_v48 = vsub.s32 %v181_v42, %v178_v38 }
   0xa   :  { %216 = vmatpush3.bf16.xpose.msra.mxu0 %v236_v2 }
   0xb   :  { %217 = vmatprep.subr.bf16.mxu0 %v244_v0 }
  0x12   :  { %218 = vmatpush3.bf16.xpose.msra.mxu0 %v237_v3 }
  0x13   :  { %219 = vmatprep.subr.bf16.mxu0 %v244_v0 }
  0x1a   :  { %220 = vmatpush3.bf16.xpose.msra.mxu0 %v238_v4 }
  0x1b   :  { %221 = vmatprep.subr.bf16.mxu0 %v244_v0 }
  0x22   :  { %222 = vmatpush3.bf16.xpose.msra.mxu0 %v239_v5 }
  0x23   :  { %223 = vmatprep.subr.bf16.mxu0 %v244_v0 }
  0x2a   :  { %224 = vmatpush3.bf16.xpose.msra.mxu0 %v240_v6 }
  0x2b   :  { %225 = vmatprep.subr.bf16.mxu0 %v244_v0 }
  0x32   :  { %226 = vmatpush3.bf16.xpose.msra.mxu0 %v241_v7 }
  0x33   :  { %227 = vmatprep.subr.bf16.mxu0 %v244_v0 }
  0x3a   :  { %228 = vmatpush3.bf16.xpose.msra.mxu0 %v242_v8 }
  0x41   :  { %230 = vmatmul.mubr.bf16.vlgmr.msra.gmra.mrb[0].mxu0 %v243_v9 }
 0x114   :  { %v122_v10 = vpop.f32.mrb[0].mxu0 }
 0x115   :  { %v129_v12 = vmul.f32 2.0, %v122_v10  ;;  %v231_v13 = vpop.f32.mrb[1].mxu0 }
 0x116   :  { %v125_v14 = vpop.f32.mrb[2].mxu0 }
 0x117   :  { %v130_v15 = vmul.f32 2.0, %v125_v14  ;;  %v232_v16 = vpop.f32.mrb[3].mxu0  ;;  %v137_v17 = vsub.f32 %v203_v11, %v129_v12 }
 0x119   :  { %141 = vmin.xlane.f32.xlu0 %v137_v17  ;;  %v138_v18 = vsub.f32 %v203_v11, %v130_v15 }
 0x11d   :  { %143 = vmin.xlane.f32.xlu0 %v138_v18 }
 0x1a6   :  { %v142_v21 = vpop.xlane.xlu0 %141 }
 0x1a7   :  { %vm145_vm1 = vcmp.eq.f32.partialorder %v137_v17, %v142_v21 }
 0x1a8   :  { %v147_v22 = vsel %vm145_vm1, %v140_v20, 128 }
 0x1a9   :  { %v150_v23 = vshra.s32 %v147_v22, 16  ;;  %v149_v29 = vand.u32 65535, %v147_v22 }
 0x1aa   :  { %v144_v24 = vpop.xlane.xlu0 %143 }
 0x1ab   :  { %vm146_vm2 = vcmp.eq.f32.partialorder %v138_v18, %v144_v24  ;;  %v152_v25 = vcvt.s32.f32 %v150_v23  ;;  %v151_v32 = vcvt.s32.f32 %v149_v29 }
 0x1ac   :  { %v148_v26 = vsel %vm146_vm2, %v140_v20, 128 }
 0x1ad   :  { %153 = vmin.xlane.f32.xlu1 %v152_v25  ;;  %v164_v27 = vshra.s32 %v148_v26, 16  ;;  %v163_v30 = vand.u32 65535, %v148_v26 }
 0x1af   :  { %v166_v28 = vcvt.s32.f32 %v164_v27  ;;  %v165_v35 = vcvt.s32.f32 %v163_v30 }
 0x1b1   :  { %167 = vmin.xlane.f32.xlu1 %v166_v28 }
 0x23a   :  { %v154_v31 = vpop.xlane.xlu1 %153 }
 0x23b   :  { %vm155_vm3 = vcmp.eq.f32.partialorder %v152_v25, %v154_v31  ;;  %v160_v37 = vcvt.f32.s32 %v154_v31 }
 0x23c   :  { %v156_v33 = vsel %vm155_vm3, %v151_v32, inf }
 0x23d   :  { %157 = vmin.xlane.f32.xlu0 %v156_v33  ;;  %v161_v43 = vshll.u32 %v160_v37, 16 }
 0x23e   :  { %v168_v34 = vpop.xlane.xlu1 %167 }
 0x23f   :  { %vm169_vm4 = vcmp.eq.f32.partialorder %v166_v28, %v168_v34  ;;  %v174_v40 = vcvt.f32.s32 %v168_v34 }
 0x240   :  { %v170_v36 = vsel %vm169_vm4, %v165_v35, inf }
 0x241   :  { %171 = vmin.xlane.f32.xlu1 %v170_v36  ;;  %v175_v46 = vshll.u32 %v174_v40, 16 }
 0x2ca   :  { %v158_v39 = vpop.xlane.xlu0 %157 }
 0x2cb   :  { %v159_v41 = vcvt.f32.s32 %v158_v39 }
 0x2cd   :  { %v162_v47 = vadd.s32 %v161_v43, %v159_v41 }
 0x2ce   :  { %v172_v45 = vpop.xlane.xlu1 %171 }
 0x2cf   :  { %v173_v49 = vcvt.f32.s32 %v172_v45  ;;  %v180_v51 = vrot.slane %v162_v47, %v179_v44 }
 0x2d1   :  { %v176_v50 = vadd.s32 %v175_v46, %v173_v49 }
 0x2d3   :  { %v185_v52 = vrot.slane %v176_v50, %v184_v48 }
 0x2d5   :  { %v187_v53 = vsel %vm186_vm5, %v185_v52, %v180_v51 }
 0x2d6   :  { %189 = vst.msk [vmem:[%s302_s3] sm:$0x1] %vm188_vm6, %v187_v53 }

</bundles_post_ra>
